<compile_context>
chip_gen: v7x
topology: tpu7x:2x2x1
jax: 0.10.0
libtpu: 0.0.40
codegen_flags: <defaults>
</compile_context>

<pallas_src>
import functools

import numpy as np
import jax
import jax.numpy as jnp
from jax.experimental import pallas as pl
from jax.experimental.pallas import tpu as pltpu


# ------------------------------- fused kernel -------------------------------- #

def _localizer_kernel(x_nd_ref, x_ft_ref, rel_ref, rinv_ref, ea_ref, pos_ref, *, n, pos_idx):
    """One batch element.

    x_nd_ref : (N, 4)  node-major  (nodes on sublanes)  -> sender-side (N, 1) columns + node outputs
    x_ft_ref : (4, N)  feature-major (nodes on lanes)   -> receiver-side (1, N) rows
    rel_ref  : (N, 4)  rel_feat
    rinv_ref : (N, 4)  Rinv flattened row-major [c, -s, s, c]
    ea_ref   : (11, N, N-1)  edge features, edge (i, k) <-> send=i, recv = k if k < i else k+1
    pos_ref  : (len(pos_idx), N, N-1)
    """
    dtype = x_nd_ref.dtype
    m = n - 1

    # ---- per-node canonicalization (node-major: (N, 1) columns) ----
    x_nd = x_nd_ref[...]                        # (N, 4)
    spx = x_nd[:, 0:1]
    spy = x_nd[:, 1:2]
    svx = x_nd[:, 2:3]
    svy = x_nd[:, 3:4]

    theta_c = jnp.arctan2(svy, svx)
    c_c = jnp.cos(theta_c)
    s_c = jnp.sin(theta_c)
    cvx_c = c_c * svx + s_c * svy
    cvy_c = -s_c * svx + c_c * svy

    # Direct slice stores (no concatenates on the minor axes).
    rel_ref[:, 0:2] = jnp.zeros((n, 2), dtype)
    rel_ref[:, 2:3] = cvx_c
    rel_ref[:, 3:4] = cvy_c

    rinv_ref[:, 0:1] = c_c
    rinv_ref[:, 1:2] = -s_c
    rinv_ref[:, 2:3] = s_c
    rinv_ref[:, 3:4] = c_c

    # ---- per-node receiver-side rows (feature-major: (1, N) rows), trig computed ONCE per node ----
    x_ft = x_ft_ref[...]                        # (4, N)
    pxr = x_ft[0:1, :]
    pyr = x_ft[1:2, :]
    vxr = x_ft[2:3, :]
    vyr = x_ft[3:4, :]
    theta_r = jnp.arctan2(vyr, vxr)
    cr = jnp.cos(theta_r)
    sr = jnp.sin(theta_r)
    cvxr = cr * vxr + sr * vyr
    cvyr = -sr * vxr + cr * vyr

    # ---- all-pairs (minus diagonal) edges, compacted to (N_send, N-1) tiles ----
    # Edge (i, k): sender = i (sublane), receiver j = k if k < i else k + 1 (lane).
    i_idx = jax.lax.broadcasted_iota(jnp.int32, (n, m), 0)
    k_idx = jax.lax.broadcasted_iota(jnp.int32, (n, m), 1)
    take_lo = k_idx < i_idx

    def sel(row):                               # row: (1, N) per-node receiver quantity
        return jnp.where(take_lo, row[:, :m], row[:, 1:])

    pxr_s, pyr_s = sel(pxr), sel(pyr)
    cr_s, sr_s = sel(cr), sel(sr)
    cvxr_s, cvyr_s = sel(cvxr), sel(cvyr)

    # Relative position rotated into the receiver frame.
    dx = spx - pxr_s
    dy = spy - pyr_s
    rx = cr_s * dx + sr_s * dy
    ry = -sr_s * dx + cr_s * dy

    # Polar representation.
    radius = jnp.sqrt(rx * rx + ry * ry)
    theta = jnp.arctan2(ry, rx)

    # Sender velocity rotated into the receiver frame; relative orientation.
    rsvx = cr_s * svx + sr_s * svy
    rsvy = -sr_s * svx + cr_s * svy
    rel_orient = jnp.arctan2(rsvy, rsvx)

    zero = jnp.zeros_like(rx)

    # [cart(2), orientation(1), polar(2), rotated send vel(2), rel_feat[recv](4)] -> 11 rows.
    feats = [rx, ry, rel_orient, radius, theta, rsvx, rsvy, zero, zero, cvxr_s, cvyr_s]
    for f, val in enumerate(feats):
        ea_ref[f] = val
    for t, f in enumerate(pos_idx):             # edge_pos written in-kernel (no wrapper gather)
        pos_ref[t] = feats[f]


# ------------------------------ pallas_call glue ------------------------------ #

def _localize_pallas(x, x_t, pos_idx):
    """x: (B, N, 4) node-major, x_t: (B, 4, N) feature-major."""
    B, N, F = x.shape
    M = N - 1
    P = len(pos_idx)
    kernel = functools.partial(_localizer_kernel, n=N, pos_idx=tuple(int(i) for i in pos_idx))
    return pl.pallas_call(
        kernel,
        out_shape=(
            jax.ShapeDtypeStruct((B, N, 4), x.dtype),          # rel_feat
            jax.ShapeDtypeStruct((B, N, 4), x.dtype),          # Rinv (flattened)
            jax.ShapeDtypeStruct((B, 11, N, M), x.dtype),      # edge_attr (feature-major pair grid)
            jax.ShapeDtypeStruct((B, P, N, M), x.dtype),       # edge_pos
        ),
        grid=(B,),
        in_specs=[
            pl.BlockSpec((None, N, F), lambda b: (b, 0, 0)),
            pl.BlockSpec((None, F, N), lambda b: (b, 0, 0)),
        ],
        out_specs=(
            pl.BlockSpec((None, N, 4), lambda b: (b, 0, 0)),
            pl.BlockSpec((None, N, 4), lambda b: (b, 0, 0)),
            pl.BlockSpec((None, 11, N, M), lambda b: (b, 0, 0, 0)),
            pl.BlockSpec((None, P, N, M), lambda b: (b, 0, 0, 0)),
        ),
        compiler_params=pltpu.CompilerParams(dimension_semantics=("parallel",)),
    )(x, x_t)


# ---------------------------------- Module ------------------------------------ #

class Localizer:
    _edge_pos_idx_fn = {
        (0, "cart"): [0, 1, 2],
        (0, "polar"): [2, 3, 4],
        (1, "cart"): [0, 1, 2, 3, 4, 5],
        (1, "polar"): [3, 4, 5, 6, 7, 8],
    }

    def __init__(self, num_vars, use_3d=False, pos_representation="polar", batched=False):
        if pos_representation not in ("cart", "polar"):
            raise ValueError
        if use_3d or batched:
            # TODO(synk): 3D and graph-batched variants not implemented in this fused kernel.
            raise NotImplementedError("Only the 2D, non-batched Localizer is implemented.")
        self.num_vars = num_vars
        self.use_3d = use_3d
        self.batched = batched
        send, recv = np.where(~np.eye(num_vars, dtype=bool))
        self.send_edges = jnp.asarray(send, dtype=jnp.int32)   # kept for API parity / reference
        self.recv_edges = jnp.asarray(recv, dtype=jnp.int32)
        self.edge_pos_idx = tuple(self._edge_pos_idx_fn[(int(use_3d), pos_representation)])
        self.num_dims = 2
        self.num_orientations = 1
        self.num_relative_features = 3 * self.num_dims + self.num_orientations
        self.num_pos_features = self.num_dims + self.num_orientations

    def __call__(self, x):
        # x: [B, N, 4]
        B, N, F = x.shape
        assert N == self.num_vars and F == 2 * self.num_dims

        # The only wrapper-side reshuffle of inputs is this O(4N) transpose (receiver lane layout);
        # all O(N^2) work and data stays inside the single fused kernel.
        x_t = jnp.transpose(x, (0, 2, 1))                            # [B, 4, N]

        rel_feat, rinv_flat, ea4, pos4 = _localize_pallas(x, x_t, self.edge_pos_idx)

        Rinv = rinv_flat.reshape(B, N, 2, 2)
        E = N * (N - 1)
        # (B, 11, N, N-1) -> (B, 11, E) is a free row-major reshape; one output transpose to [B, E, 11].
        edge_attr = jnp.transpose(ea4.reshape(B, 11, E), (0, 2, 1))
        edge_pos = jnp.transpose(pos4.reshape(B, len(self.edge_pos_idx), E), (0, 2, 1))
        return rel_feat, Rinv, edge_attr, edge_pos


# ------------------------------ pure-JAX reference ---------------------------- #

def _reference_forward(x, send, recv, edge_pos_idx):
    vx, vy = x[..., 2], x[..., 3]
    theta = jnp.arctan2(vy, vx)
    c, s = jnp.cos(theta), jnp.sin(theta)
    cvx = c * vx + s * vy
    cvy = -s * vx + c * vy
    rel_feat = jnp.stack([jnp.zeros_like(cvx), jnp.zeros_like(cvy), cvx, cvy], -1)
    R = jnp.stack([jnp.stack([c, s], -1), jnp.stack([-s, c], -1)], -2)
    Rinv = jnp.swapaxes(R, -1, -2)

    xs, xr = x[:, send], x[:, recv]
    tr = jnp.arctan2(xr[..., 3], xr[..., 2])
    cc, ss = jnp.cos(tr), jnp.sin(tr)
    dx, dy = xs[..., 0] - xr[..., 0], xs[..., 1] - xr[..., 1]
    rx, ry = cc * dx + ss * dy, -ss * dx + cc * dy
    radius = jnp.sqrt(rx * rx + ry * ry)
    th = jnp.arctan2(ry, rx)
    rsvx = cc * xs[..., 2] + ss * xs[..., 3]
    rsvy = -ss * xs[..., 2] + cc * xs[..., 3]
    ro = jnp.arctan2(rsvy, rsvx)
    ea = jnp.stack([rx, ry, ro, radius, th, rsvx, rsvy], -1)
    ea = jnp.concatenate([ea, rel_feat[:, recv]], -1)
    return rel_feat, Rinv, ea, ea[..., edge_pos_idx]


# ------------------------------------ main ------------------------------------ #

if __name__ == "__main__":
    key = jax.random.PRNGKey(0)
    B, N = 2, 5                      # batch=2, num_vars=5 -> E = N*(N-1) = 20
    x = jax.random.normal(key, (B, N, 4), dtype=jnp.float32)

    loc = Localizer(num_vars=N, use_3d=False, pos_representation="polar", batched=False)
    rel_feat, Rinv, edge_attr, edge_pos = loc(x)
    jax.block_until_ready((rel_feat, Rinv, edge_attr, edge_pos))

    # Sanity check against a pure-JAX reference (same math, XLA transcendentals).
    ref = _reference_forward(x, loc.send_edges, loc.recv_edges, np.asarray(loc.edge_pos_idx))
    for got, want in zip((rel_feat, Rinv, edge_attr, edge_pos), ref):
        np.testing.assert_allclose(np.asarray(got), np.asarray(want), rtol=1e-3, atol=1e-3)

    assert rel_feat.shape == (B, N, 4)
    assert Rinv.shape == (B, N, 2, 2)
    assert edge_attr.shape == (B, N * (N - 1), 11)
    assert edge_pos.shape == (B, N * (N - 1), 3)

    print("KERNEL_OK")
</pallas_src>

<mosaic_0001>
module attributes {stable_mosaic.version = 11 : i64} {
  func.func @_localizer_kernel(%arg0: i32, %arg1: memref<1x5x4xf32, #tpu.memory_space<vmem>>, %arg2: memref<1x4x5xf32, #tpu.memory_space<vmem>>, %arg3: memref<1x5x4xf32, #tpu.memory_space<vmem>>, %arg4: memref<1x5x4xf32, #tpu.memory_space<vmem>>, %arg5: memref<1x11x5x4xf32, #tpu.memory_space<vmem>>, %arg6: memref<1x3x5x4xf32, #tpu.memory_space<vmem>>) attributes {dimension_semantics = [#tpu.dimension_semantics<parallel>], iteration_bounds = array<i64: 2>, scalar_prefetch = 0 : i64, scratch_operands = 0 : i64, tpu.core_type = #tpu.core_type<tc>, window_params = [{transform_indices = @transform_0, window_bounds = array<i64: 1, 5, 4>}, {transform_indices = @transform_1, window_bounds = array<i64: 1, 4, 5>}, {transform_indices = @transform_2, window_bounds = array<i64: 1, 5, 4>}, {transform_indices = @transform_3, window_bounds = array<i64: 1, 5, 4>}, {transform_indices = @transform_4, window_bounds = array<i64: 1, 11, 5, 4>}, {transform_indices = @transform_5, window_bounds = array<i64: 1, 3, 5, 4>}]} {
    %c0 = arith.constant 0 : index
    %c0_0 = arith.constant 0 : index
    %c0_1 = arith.constant 0 : index
    %0 = vector.load %arg1[%c0, %c0_0, %c0_1] : memref<1x5x4xf32, #tpu.memory_space<vmem>>, vector<1x5x4xf32>
    %1 = vector.shape_cast %0 : vector<1x5x4xf32> to vector<5x4xf32>
    %2 = vector.extract_strided_slice %1 {offsets = [0, 0], sizes = [5, 1], strides = [1, 1]} : vector<5x4xf32> to vector<5x1xf32>
    %3 = vector.extract_strided_slice %1 {offsets = [0, 1], sizes = [5, 1], strides = [1, 1]} : vector<5x4xf32> to vector<5x1xf32>
    %4 = vector.extract_strided_slice %1 {offsets = [0, 2], sizes = [5, 1], strides = [1, 1]} : vector<5x4xf32> to vector<5x1xf32>
    %5 = vector.extract_strided_slice %1 {offsets = [0, 3], sizes = [5, 1], strides = [1, 1]} : vector<5x4xf32> to vector<5x1xf32>
    %6 = math.atan2 %5, %4 : vector<5x1xf32>
    %7 = math.cos %6 : vector<5x1xf32>
    %8 = math.sin %6 : vector<5x1xf32>
    %9 = arith.mulf %7, %4 : vector<5x1xf32>
    %10 = arith.mulf %8, %5 : vector<5x1xf32>
    %11 = arith.addf %9, %10 : vector<5x1xf32>
    %cst = arith.constant 0.000000e+00 : f32
    %12 = vector.broadcast %cst : f32 to vector<5x1xf32>
    %13 = arith.subf %12, %8 : vector<5x1xf32>
    %14 = arith.mulf %13, %4 : vector<5x1xf32>
    %15 = arith.mulf %7, %5 : vector<5x1xf32>
    %16 = arith.addf %14, %15 : vector<5x1xf32>
    %cst_2 = arith.constant 0.000000e+00 : f32
    %17 = vector.broadcast %cst_2 : f32 to vector<5x2xf32>
    %c0_3 = arith.constant 0 : index
    %c0_4 = arith.constant 0 : index
    %c0_5 = arith.constant 0 : index
    %18 = vector.load %arg3[%c0_3, %c0_4, %c0_5] : memref<1x5x4xf32, #tpu.memory_space<vmem>>, vector<1x5x2xf32>
    %19 = vector.shape_cast %18 : vector<1x5x2xf32> to vector<5x2xf32>
    %20 = vector.shape_cast %17 : vector<5x2xf32> to vector<1x5x2xf32>
    tpu.vector_store %arg3[%c0_3, %c0_4, %c0_5], %20 {strides = array<i32>} : memref<1x5x4xf32, #tpu.memory_space<vmem>>, vector<1x5x2xf32>,
    %c0_6 = arith.constant 0 : index
    %c0_7 = arith.constant 0 : index
    %c2 = arith.constant 2 : index
    %21 = vector.load %arg3[%c0_6, %c0_7, %c2] : memref<1x5x4xf32, #tpu.memory_space<vmem>>, vector<1x5x1xf32>
    %22 = vector.shape_cast %21 : vector<1x5x1xf32> to vector<5x1xf32>
    %23 = vector.shape_cast %11 : vector<5x1xf32> to vector<1x5x1xf32>
    tpu.vector_store %arg3[%c0_6, %c0_7, %c2], %23 {strides = array<i32>} : memref<1x5x4xf32, #tpu.memory_space<vmem>>, vector<1x5x1xf32>,
    %c0_8 = arith.constant 0 : index
    %c0_9 = arith.constant 0 : index
    %c3 = arith.constant 3 : index
    %24 = vector.load %arg3[%c0_8, %c0_9, %c3] : memref<1x5x4xf32, #tpu.memory_space<vmem>>, vector<1x5x1xf32>
    %25 = vector.shape_cast %24 : vector<1x5x1xf32> to vector<5x1xf32>
    %26 = vector.shape_cast %16 : vector<5x1xf32> to vector<1x5x1xf32>
    tpu.vector_store %arg3[%c0_8, %c0_9, %c3], %26 {strides = array<i32>} : memref<1x5x4xf32, #tpu.memory_space<vmem>>, vector<1x5x1xf32>,
    %c0_10 = arith.constant 0 : index
    %c0_11 = arith.constant 0 : index
    %c0_12 = arith.constant 0 : index
    %27 = vector.load %arg4[%c0_10, %c0_11, %c0_12] : memref<1x5x4xf32, #tpu.memory_space<vmem>>, vector<1x5x1xf32>
    %28 = vector.shape_cast %27 : vector<1x5x1xf32> to vector<5x1xf32>
    %29 = vector.shape_cast %7 : vector<5x1xf32> to vector<1x5x1xf32>
    tpu.vector_store %arg4[%c0_10, %c0_11, %c0_12], %29 {strides = array<i32>} : memref<1x5x4xf32, #tpu.memory_space<vmem>>, vector<1x5x1xf32>,
    %cst_13 = arith.constant 0.000000e+00 : f32
    %30 = vector.broadcast %cst_13 : f32 to vector<5x1xf32>
    %31 = arith.subf %30, %8 : vector<5x1xf32>
    %c0_14 = arith.constant 0 : index
    %c0_15 = arith.constant 0 : index
    %c1 = arith.constant 1 : index
    %32 = vector.load %arg4[%c0_14, %c0_15, %c1] : memref<1x5x4xf32, #tpu.memory_space<vmem>>, vector<1x5x1xf32>
    %33 = vector.shape_cast %32 : vector<1x5x1xf32> to vector<5x1xf32>
    %34 = vector.shape_cast %31 : vector<5x1xf32> to vector<1x5x1xf32>
    tpu.vector_store %arg4[%c0_14, %c0_15, %c1], %34 {strides = array<i32>} : memref<1x5x4xf32, #tpu.memory_space<vmem>>, vector<1x5x1xf32>,
    %c0_16 = arith.constant 0 : index
    %c0_17 = arith.constant 0 : index
    %c2_18 = arith.constant 2 : index
    %35 = vector.load %arg4[%c0_16, %c0_17, %c2_18] : memref<1x5x4xf32, #tpu.memory_space<vmem>>, vector<1x5x1xf32>
    %36 = vector.shape_cast %35 : vector<1x5x1xf32> to vector<5x1xf32>
    %37 = vector.shape_cast %8 : vector<5x1xf32> to vector<1x5x1xf32>
    tpu.vector_store %arg4[%c0_16, %c0_17, %c2_18], %37 {strides = array<i32>} : memref<1x5x4xf32, #tpu.memory_space<vmem>>, vector<1x5x1xf32>,
    %c0_19 = arith.constant 0 : index
    %c0_20 = arith.constant 0 : index
    %c3_21 = arith.constant 3 : index
    %38 = vector.load %arg4[%c0_19, %c0_20, %c3_21] : memref<1x5x4xf32, #tpu.memory_space<vmem>>, vector<1x5x1xf32>
    %39 = vector.shape_cast %38 : vector<1x5x1xf32> to vector<5x1xf32>
    %40 = vector.shape_cast %7 : vector<5x1xf32> to vector<1x5x1xf32>
    tpu.vector_store %arg4[%c0_19, %c0_20, %c3_21], %40 {strides = array<i32>} : memref<1x5x4xf32, #tpu.memory_space<vmem>>, vector<1x5x1xf32>,
    %c0_22 = arith.constant 0 : index
    %c0_23 = arith.constant 0 : index
    %c0_24 = arith.constant 0 : index
    %41 = vector.load %arg2[%c0_22, %c0_23, %c0_24] : memref<1x4x5xf32, #tpu.memory_space<vmem>>, vector<1x4x5xf32>
    %42 = vector.shape_cast %41 : vector<1x4x5xf32> to vector<4x5xf32>
    %43 = vector.extract_strided_slice %42 {offsets = [0, 0], sizes = [1, 5], strides = [1, 1]} : vector<4x5xf32> to vector<1x5xf32>
    %44 = vector.extract_strided_slice %42 {offsets = [1, 0], sizes = [1, 5], strides = [1, 1]} : vector<4x5xf32> to vector<1x5xf32>
    %45 = vector.extract_strided_slice %42 {offsets = [2, 0], sizes = [1, 5], strides = [1, 1]} : vector<4x5xf32> to vector<1x5xf32>
    %46 = vector.extract_strided_slice %42 {offsets = [3, 0], sizes = [1, 5], strides = [1, 1]} : vector<4x5xf32> to vector<1x5xf32>
    %47 = math.atan2 %46, %45 : vector<1x5xf32>
    %48 = math.cos %47 : vector<1x5xf32>
    %49 = math.sin %47 : vector<1x5xf32>
    %50 = arith.mulf %48, %45 : vector<1x5xf32>
    %51 = arith.mulf %49, %46 : vector<1x5xf32>
    %52 = arith.addf %50, %51 : vector<1x5xf32>
    %cst_25 = arith.constant 0.000000e+00 : f32
    %53 = vector.broadcast %cst_25 : f32 to vector<1x5xf32>
    %54 = arith.subf %53, %49 : vector<1x5xf32>
    %55 = arith.mulf %54, %45 : vector<1x5xf32>
    %56 = arith.mulf %48, %46 : vector<1x5xf32>
    %57 = arith.addf %55, %56 : vector<1x5xf32>
    %58 = tpu.iota {dimensions = array<i32: 0>} : vector<5x4xi32>
    %59 = tpu.iota {dimensions = array<i32: 1>} : vector<5x4xi32>
    %60 = arith.cmpi slt, %59, %58 : vector<5x4xi32>
    %61 = vector.extract_strided_slice %43 {offsets = [0, 0], sizes = [1, 4], strides = [1, 1]} : vector<1x5xf32> to vector<1x4xf32>
    %62 = vector.extract_strided_slice %43 {offsets = [0, 1], sizes = [1, 4], strides = [1, 1]} : vector<1x5xf32> to vector<1x4xf32>
    %63 = vector.shape_cast %61 : vector<1x4xf32> to vector<1x4xf32>
    %64 = vector.broadcast %63 : vector<1x4xf32> to vector<5x4xf32>
    %65 = vector.shape_cast %62 : vector<1x4xf32> to vector<1x4xf32>
    %66 = vector.broadcast %65 : vector<1x4xf32> to vector<5x4xf32>
    %67 = arith.select %60, %64, %66 : vector<5x4xi1>, vector<5x4xf32>
    %68 = vector.extract_strided_slice %44 {offsets = [0, 0], sizes = [1, 4], strides = [1, 1]} : vector<1x5xf32> to vector<1x4xf32>
    %69 = vector.extract_strided_slice %44 {offsets = [0, 1], sizes = [1, 4], strides = [1, 1]} : vector<1x5xf32> to vector<1x4xf32>
    %70 = vector.shape_cast %68 : vector<1x4xf32> to vector<1x4xf32>
    %71 = vector.broadcast %70 : vector<1x4xf32> to vector<5x4xf32>
    %72 = vector.shape_cast %69 : vector<1x4xf32> to vector<1x4xf32>
    %73 = vector.broadcast %72 : vector<1x4xf32> to vector<5x4xf32>
    %74 = arith.select %60, %71, %73 : vector<5x4xi1>, vector<5x4xf32>
    %75 = vector.extract_strided_slice %48 {offsets = [0, 0], sizes = [1, 4], strides = [1, 1]} : vector<1x5xf32> to vector<1x4xf32>
    %76 = vector.extract_strided_slice %48 {offsets = [0, 1], sizes = [1, 4], strides = [1, 1]} : vector<1x5xf32> to vector<1x4xf32>
    %77 = vector.shape_cast %75 : vector<1x4xf32> to vector<1x4xf32>
    %78 = vector.broadcast %77 : vector<1x4xf32> to vector<5x4xf32>
    %79 = vector.shape_cast %76 : vector<1x4xf32> to vector<1x4xf32>
    %80 = vector.broadcast %79 : vector<1x4xf32> to vector<5x4xf32>
    %81 = arith.select %60, %78, %80 : vector<5x4xi1>, vector<5x4xf32>
    %82 = vector.extract_strided_slice %49 {offsets = [0, 0], sizes = [1, 4], strides = [1, 1]} : vector<1x5xf32> to vector<1x4xf32>
    %83 = vector.extract_strided_slice %49 {offsets = [0, 1], sizes = [1, 4], strides = [1, 1]} : vector<1x5xf32> to vector<1x4xf32>
    %84 = vector.shape_cast %82 : vector<1x4xf32> to vector<1x4xf32>
    %85 = vector.broadcast %84 : vector<1x4xf32> to vector<5x4xf32>
    %86 = vector.shape_cast %83 : vector<1x4xf32> to vector<1x4xf32>
    %87 = vector.broadcast %86 : vector<1x4xf32> to vector<5x4xf32>
    %88 = arith.select %60, %85, %87 : vector<5x4xi1>, vector<5x4xf32>
    %89 = vector.extract_strided_slice %52 {offsets = [0, 0], sizes = [1, 4], strides = [1, 1]} : vector<1x5xf32> to vector<1x4xf32>
    %90 = vector.extract_strided_slice %52 {offsets = [0, 1], sizes = [1, 4], strides = [1, 1]} : vector<1x5xf32> to vector<1x4xf32>
    %91 = vector.shape_cast %89 : vector<1x4xf32> to vector<1x4xf32>
    %92 = vector.broadcast %91 : vector<1x4xf32> to vector<5x4xf32>
    %93 = vector.shape_cast %90 : vector<1x4xf32> to vector<1x4xf32>
    %94 = vector.broadcast %93 : vector<1x4xf32> to vector<5x4xf32>
    %95 = arith.select %60, %92, %94 : vector<5x4xi1>, vector<5x4xf32>
    %96 = vector.extract_strided_slice %57 {offsets = [0, 0], sizes = [1, 4], strides = [1, 1]} : vector<1x5xf32> to vector<1x4xf32>
    %97 = vector.extract_strided_slice %57 {offsets = [0, 1], sizes = [1, 4], strides = [1, 1]} : vector<1x5xf32> to vector<1x4xf32>
    %98 = vector.shape_cast %96 : vector<1x4xf32> to vector<1x4xf32>
    %99 = vector.broadcast %98 : vector<1x4xf32> to vector<5x4xf32>
    %100 = vector.shape_cast %97 : vector<1x4xf32> to vector<1x4xf32>
    %101 = vector.broadcast %100 : vector<1x4xf32> to vector<5x4xf32>
    %102 = arith.select %60, %99, %101 : vector<5x4xi1>, vector<5x4xf32>
    %103 = vector.broadcast %2 : vector<5x1xf32> to vector<5x4xf32>
    %104 = arith.subf %103, %67 : vector<5x4xf32>
    %105 = vector.broadcast %3 : vector<5x1xf32> to vector<5x4xf32>
    %106 = arith.subf %105, %74 : vector<5x4xf32>
    %107 = arith.mulf %81, %104 : vector<5x4xf32>
    %108 = arith.mulf %88, %106 : vector<5x4xf32>
    %109 = arith.addf %107, %108 : vector<5x4xf32>
    %cst_26 = arith.constant 0.000000e+00 : f32
    %110 = vector.broadcast %cst_26 : f32 to vector<5x4xf32>
    %111 = arith.subf %110, %88 : vector<5x4xf32>
    %112 = arith.mulf %111, %104 : vector<5x4xf32>
    %113 = arith.mulf %81, %106 : vector<5x4xf32>
    %114 = arith.addf %112, %113 : vector<5x4xf32>
    %115 = arith.mulf %109, %109 : vector<5x4xf32>
    %116 = arith.mulf %114, %114 : vector<5x4xf32>
    %117 = arith.addf %115, %116 : vector<5x4xf32>
    %118 = math.sqrt %117 : vector<5x4xf32>
    %119 = math.atan2 %114, %109 : vector<5x4xf32>
    %120 = vector.broadcast %4 : vector<5x1xf32> to vector<5x4xf32>
    %121 = arith.mulf %81, %120 : vector<5x4xf32>
    %122 = vector.broadcast %5 : vector<5x1xf32> to vector<5x4xf32>
    %123 = arith.mulf %88, %122 : vector<5x4xf32>
    %124 = arith.addf %121, %123 : vector<5x4xf32>
    %cst_27 = arith.constant 0.000000e+00 : f32
    %125 = vector.broadcast %cst_27 : f32 to vector<5x4xf32>
    %126 = arith.subf %125, %88 : vector<5x4xf32>
    %127 = vector.broadcast %4 : vector<5x1xf32> to vector<5x4xf32>
    %128 = arith.mulf %126, %127 : vector<5x4xf32>
    %129 = vector.broadcast %5 : vector<5x1xf32> to vector<5x4xf32>
    %130 = arith.mulf %81, %129 : vector<5x4xf32>
    %131 = arith.addf %128, %130 : vector<5x4xf32>
    %132 = math.atan2 %131, %124 : vector<5x4xf32>
    %cst_28 = arith.constant 0.000000e+00 : f32
    %133 = vector.broadcast %cst_28 : f32 to vector<5x4xf32>
    %c0_29 = arith.constant 0 : index
    %c0_30 = arith.constant 0 : index
    %c0_31 = arith.constant 0 : index
    %c0_32 = arith.constant 0 : index
    %134 = vector.load %arg5[%c0_29, %c0_30, %c0_31, %c0_32] : memref<1x11x5x4xf32, #tpu.memory_space<vmem>>, vector<1x1x5x4xf32>
    %135 = vector.shape_cast %134 : vector<1x1x5x4xf32> to vector<5x4xf32>
    %136 = vector.shape_cast %109 : vector<5x4xf32> to vector<1x1x5x4xf32>
    tpu.vector_store %arg5[%c0_29, %c0_30, %c0_31, %c0_32], %136 {strides = array<i32>} : memref<1x11x5x4xf32, #tpu.memory_space<vmem>>, vector<1x1x5x4xf32>,
    %c0_33 = arith.constant 0 : index
    %c1_34 = arith.constant 1 : index
    %c0_35 = arith.constant 0 : index
    %c0_36 = arith.constant 0 : index
    %137 = vector.load %arg5[%c0_33, %c1_34, %c0_35, %c0_36] : memref<1x11x5x4xf32, #tpu.memory_space<vmem>>, vector<1x1x5x4xf32>
    %138 = vector.shape_cast %137 : vector<1x1x5x4xf32> to vector<5x4xf32>
    %139 = vector.shape_cast %114 : vector<5x4xf32> to vector<1x1x5x4xf32>
    tpu.vector_store %arg5[%c0_33, %c1_34, %c0_35, %c0_36], %139 {strides = array<i32>} : memref<1x11x5x4xf32, #tpu.memory_space<vmem>>, vector<1x1x5x4xf32>,
    %c0_37 = arith.constant 0 : index
    %c2_38 = arith.constant 2 : index
    %c0_39 = arith.constant 0 : index
    %c0_40 = arith.constant 0 : index
    %140 = vector.load %arg5[%c0_37, %c2_38, %c0_39, %c0_40] : memref<1x11x5x4xf32, #tpu.memory_space<vmem>>, vector<1x1x5x4xf32>
    %141 = vector.shape_cast %140 : vector<1x1x5x4xf32> to vector<5x4xf32>
    %142 = vector.shape_cast %132 : vector<5x4xf32> to vector<1x1x5x4xf32>
    tpu.vector_store %arg5[%c0_37, %c2_38, %c0_39, %c0_40], %142 {strides = array<i32>} : memref<1x11x5x4xf32, #tpu.memory_space<vmem>>, vector<1x1x5x4xf32>,
    %c0_41 = arith.constant 0 : index
    %c3_42 = arith.constant 3 : index
    %c0_43 = arith.constant 0 : index
    %c0_44 = arith.constant 0 : index
    %143 = vector.load %arg5[%c0_41, %c3_42, %c0_43, %c0_44] : memref<1x11x5x4xf32, #tpu.memory_space<vmem>>, vector<1x1x5x4xf32>
    %144 = vector.shape_cast %143 : vector<1x1x5x4xf32> to vector<5x4xf32>
    %145 = vector.shape_cast %118 : vector<5x4xf32> to vector<1x1x5x4xf32>
    tpu.vector_store %arg5[%c0_41, %c3_42, %c0_43, %c0_44], %145 {strides = array<i32>} : memref<1x11x5x4xf32, #tpu.memory_space<vmem>>, vector<1x1x5x4xf32>,
    %c0_45 = arith.constant 0 : index
    %c4 = arith.constant 4 : index
    %c0_46 = arith.constant 0 : index
    %c0_47 = arith.constant 0 : index
    %146 = vector.load %arg5[%c0_45, %c4, %c0_46, %c0_47] : memref<1x11x5x4xf32, #tpu.memory_space<vmem>>, vector<1x1x5x4xf32>
    %147 = vector.shape_cast %146 : vector<1x1x5x4xf32> to vector<5x4xf32>
    %148 = vector.shape_cast %119 : vector<5x4xf32> to vector<1x1x5x4xf32>
    tpu.vector_store %arg5[%c0_45, %c4, %c0_46, %c0_47], %148 {strides = array<i32>} : memref<1x11x5x4xf32, #tpu.memory_space<vmem>>, vector<1x1x5x4xf32>,
    %c0_48 = arith.constant 0 : index
    %c5 = arith.constant 5 : index
    %c0_49 = arith.constant 0 : index
    %c0_50 = arith.constant 0 : index
    %149 = vector.load %arg5[%c0_48, %c5, %c0_49, %c0_50] : memref<1x11x5x4xf32, #tpu.memory_space<vmem>>, vector<1x1x5x4xf32>
    %150 = vector.shape_cast %149 : vector<1x1x5x4xf32> to vector<5x4xf32>
    %151 = vector.shape_cast %124 : vector<5x4xf32> to vector<1x1x5x4xf32>
    tpu.vector_store %arg5[%c0_48, %c5, %c0_49, %c0_50], %151 {strides = array<i32>} : memref<1x11x5x4xf32, #tpu.memory_space<vmem>>, vector<1x1x5x4xf32>,
    %c0_51 = arith.constant 0 : index
    %c6 = arith.constant 6 : index
    %c0_52 = arith.constant 0 : index
    %c0_53 = arith.constant 0 : index
    %152 = vector.load %arg5[%c0_51, %c6, %c0_52, %c0_53] : memref<1x11x5x4xf32, #tpu.memory_space<vmem>>, vector<1x1x5x4xf32>
    %153 = vector.shape_cast %152 : vector<1x1x5x4xf32> to vector<5x4xf32>
    %154 = vector.shape_cast %131 : vector<5x4xf32> to vector<1x1x5x4xf32>
    tpu.vector_store %arg5[%c0_51, %c6, %c0_52, %c0_53], %154 {strides = array<i32>} : memref<1x11x5x4xf32, #tpu.memory_space<vmem>>, vector<1x1x5x4xf32>,
    %c0_54 = arith.constant 0 : index
    %c7 = arith.constant 7 : index
    %c0_55 = arith.constant 0 : index
    %c0_56 = arith.constant 0 : index
    %155 = vector.load %arg5[%c0_54, %c7, %c0_55, %c0_56] : memref<1x11x5x4xf32, #tpu.memory_space<vmem>>, vector<1x1x5x4xf32>
    %156 = vector.shape_cast %155 : vector<1x1x5x4xf32> to vector<5x4xf32>
    %157 = vector.shape_cast %133 : vector<5x4xf32> to vector<1x1x5x4xf32>
    tpu.vector_store %arg5[%c0_54, %c7, %c0_55, %c0_56], %157 {strides = array<i32>} : memref<1x11x5x4xf32, #tpu.memory_space<vmem>>, vector<1x1x5x4xf32>,
    %c0_57 = arith.constant 0 : index
    %c8 = arith.constant 8 : index
    %c0_58 = arith.constant 0 : index
    %c0_59 = arith.constant 0 : index
    %158 = vector.load %arg5[%c0_57, %c8, %c0_58, %c0_59] : memref<1x11x5x4xf32, #tpu.memory_space<vmem>>, vector<1x1x5x4xf32>
    %159 = vector.shape_cast %158 : vector<1x1x5x4xf32> to vector<5x4xf32>
    %160 = vector.shape_cast %133 : vector<5x4xf32> to vector<1x1x5x4xf32>
    tpu.vector_store %arg5[%c0_57, %c8, %c0_58, %c0_59], %160 {strides = array<i32>} : memref<1x11x5x4xf32, #tpu.memory_space<vmem>>, vector<1x1x5x4xf32>,
    %c0_60 = arith.constant 0 : index
    %c9 = arith.constant 9 : index
    %c0_61 = arith.constant 0 : index
    %c0_62 = arith.constant 0 : index
    %161 = vector.load %arg5[%c0_60, %c9, %c0_61, %c0_62] : memref<1x11x5x4xf32, #tpu.memory_space<vmem>>, vector<1x1x5x4xf32>
    %162 = vector.shape_cast %161 : vector<1x1x5x4xf32> to vector<5x4xf32>
    %163 = vector.shape_cast %95 : vector<5x4xf32> to vector<1x1x5x4xf32>
    tpu.vector_store %arg5[%c0_60, %c9, %c0_61, %c0_62], %163 {strides = array<i32>} : memref<1x11x5x4xf32, #tpu.memory_space<vmem>>, vector<1x1x5x4xf32>,
    %c0_63 = arith.constant 0 : index
    %c10 = arith.constant 10 : index
    %c0_64 = arith.constant 0 : index
    %c0_65 = arith.constant 0 : index
    %164 = vector.load %arg5[%c0_63, %c10, %c0_64, %c0_65] : memref<1x11x5x4xf32, #tpu.memory_space<vmem>>, vector<1x1x5x4xf32>
    %165 = vector.shape_cast %164 : vector<1x1x5x4xf32> to vector<5x4xf32>
    %166 = vector.shape_cast %102 : vector<5x4xf32> to vector<1x1x5x4xf32>
    tpu.vector_store %arg5[%c0_63, %c10, %c0_64, %c0_65], %166 {strides = array<i32>} : memref<1x11x5x4xf32, #tpu.memory_space<vmem>>, vector<1x1x5x4xf32>,
    %c0_66 = arith.constant 0 : index
    %c0_67 = arith.constant 0 : index
    %c0_68 = arith.constant 0 : index
    %c0_69 = arith.constant 0 : index
    %167 = vector.load %arg6[%c0_66, %c0_67, %c0_68, %c0_69] : memref<1x3x5x4xf32, #tpu.memory_space<vmem>>, vector<1x1x5x4xf32>
    %168 = vector.shape_cast %167 : vector<1x1x5x4xf32> to vector<5x4xf32>
    %169 = vector.shape_cast %132 : vector<5x4xf32> to vector<1x1x5x4xf32>
    tpu.vector_store %arg6[%c0_66, %c0_67, %c0_68, %c0_69], %169 {strides = array<i32>} : memref<1x3x5x4xf32, #tpu.memory_space<vmem>>, vector<1x1x5x4xf32>,
    %c0_70 = arith.constant 0 : index
    %c1_71 = arith.constant 1 : index
    %c0_72 = arith.constant 0 : index
    %c0_73 = arith.constant 0 : index
    %170 = vector.load %arg6[%c0_70, %c1_71, %c0_72, %c0_73] : memref<1x3x5x4xf32, #tpu.memory_space<vmem>>, vector<1x1x5x4xf32>
    %171 = vector.shape_cast %170 : vector<1x1x5x4xf32> to vector<5x4xf32>
    %172 = vector.shape_cast %118 : vector<5x4xf32> to vector<1x1x5x4xf32>
    tpu.vector_store %arg6[%c0_70, %c1_71, %c0_72, %c0_73], %172 {strides = array<i32>} : memref<1x3x5x4xf32, #tpu.memory_space<vmem>>, vector<1x1x5x4xf32>,
    %c0_74 = arith.constant 0 : index
    %c2_75 = arith.constant 2 : index
    %c0_76 = arith.constant 0 : index
    %c0_77 = arith.constant 0 : index
    %173 = vector.load %arg6[%c0_74, %c2_75, %c0_76, %c0_77] : memref<1x3x5x4xf32, #tpu.memory_space<vmem>>, vector<1x1x5x4xf32>
    %174 = vector.shape_cast %173 : vector<1x1x5x4xf32> to vector<5x4xf32>
    %175 = vector.shape_cast %119 : vector<5x4xf32> to vector<1x1x5x4xf32>
    tpu.vector_store %arg6[%c0_74, %c2_75, %c0_76, %c0_77], %175 {strides = array<i32>} : memref<1x3x5x4xf32, #tpu.memory_space<vmem>>, vector<1x1x5x4xf32>,
    return
  }
  func.func @transform_0(%arg0: i32) -> (i32, i32, i32) {
    %c0_i32 = arith.constant 0 : i32
    %c0_i32_0 = arith.constant 0 : i32
    %c0_i32_1 = arith.constant 0 : i32
    return %arg0, %c0_i32, %c0_i32_0 : i32, i32, i32
  }
  func.func @transform_1(%arg0: i32) -> (i32, i32, i32) {
    %c0_i32 = arith.constant 0 : i32
    %c0_i32_0 = arith.constant 0 : i32
    %c0_i32_1 = arith.constant 0 : i32
    return %arg0, %c0_i32, %c0_i32_0 : i32, i32, i32
  }
  func.func @transform_2(%arg0: i32) -> (i32, i32, i32) {
    %c0_i32 = arith.constant 0 : i32
    %c0_i32_0 = arith.constant 0 : i32
    %c0_i32_1 = arith.constant 0 : i32
    return %arg0, %c0_i32, %c0_i32_0 : i32, i32, i32
  }
  func.func @transform_3(%arg0: i32) -> (i32, i32, i32) {
    %c0_i32 = arith.constant 0 : i32
    %c0_i32_0 = arith.constant 0 : i32
    %c0_i32_1 = arith.constant 0 : i32
    return %arg0, %c0_i32, %c0_i32_0 : i32, i32, i32
  }
  func.func @transform_4(%arg0: i32) -> (i32, i32, i32, i32) {
    %c0_i32 = arith.constant 0 : i32
    %c0_i32_0 = arith.constant 0 : i32
    %c0_i32_1 = arith.constant 0 : i32
    %c0_i32_2 = arith.constant 0 : i32
    return %arg0, %c0_i32, %c0_i32_0, %c0_i32_1 : i32, i32, i32, i32
  }
  func.func @transform_5(%arg0: i32) -> (i32, i32, i32, i32) {
    %c0_i32 = arith.constant 0 : i32
    %c0_i32_0 = arith.constant 0 : i32
    %c0_i32_1 = arith.constant 0 : i32
    %c0_i32_2 = arith.constant 0 : i32
    return %arg0, %c0_i32, %c0_i32_0, %c0_i32_1 : i32, i32, i32, i32
  }
}

</mosaic_0001>

<bundles_post_ra>
// kernel: tpu_custom_call.1
= control target key start
LH: loop header
LB: loop body
LE: loop exit
PB: predicated region body
PF: predicated region fallthrough
CT: control target
= control target key end

     0   :  { %s1367_s18 = smov 0   ;;  %s1729_s0 = inlined_call_operand.vmem [shape: f32[2,5,4], index: 0, kind: input, shape index: {}]   ;;  %s1730_s1 = inlined_call_operand.vmem [shape: f32[2,4,5], index: 1, kind: input, shape index: {}]   ;;  %s1731_s2 = inlined_call_operand.vmem [shape: f32[2,5,4], index: 2, kind: output, shape index: {0}]   ;;  %s1732_s3 = inlined_call_operand.vmem [shape: f32[2,5,4], index: 3, kind: output, shape index: {1}]   ;;  %s1733_s4 = inlined_call_operand.vmem [shape: f32[2,11,5,4], index: 4, kind: output, shape index: {2}]   ;;  %s1734_s5 = inlined_call_operand.vmem [shape: f32[2,3,5,4], index: 5, kind: output, shape index: {3}]  }
   0x1 LB: > { %s1214_s19 = sadd.s32 4294967295, %s1319_s18   ;;  %p1218_p0 = scmp.ge.s32.totalorder %s1319_s18, 1  ;;  %s1319_s18 = sphi %s1367_s18, %s16_s18  }
   0x2   : > { %p202_p1 = scmp.lt.s32.totalorder %s1319_s18, 3 }
   0x4   : > { %p203_p2 = pnand %p1218_p0, %p202_p1 }
   0x5   : > { %p246_p3 = scmp.lt.s32.totalorder (!%p203_p2), %s1214_s19, 1  ;;  %v1321_v0 = vmov (!%p203_p2), 1   ;;  %s1322_s28 = smov (!%p203_p2), 1   ;;  %v1323_v5 = vmov (!%p203_p2), 0   ;;  %v1324_v8 = vmov (!%p203_p2), 2   ;;  %v1325_v9 = vmov (!%p203_p2), 3  }
   0x6   : > { %206 = sbr.rel (%p203_p2) target bundleno = 402 (0x192), region = 28  ;;  %1290 = vset.pattern.permute.xlu1 (!%p203_p2), %v1321_v0  ;;  %1289 = vset.pattern.permute.xlu0 (!%p203_p2), %v1323_v5  ;;  %v831_v10 = vlaneseq (!%p203_p2)  ;;  %s1326_s29 = smov (!%p203_p2), 127   ;;  %v1327_v42 = vmov (!%p203_p2), 0.0   ;;  %v1328_v45 = vmov (!%p203_p2), 0.7853982  }
   0x7   : > { %v1329_v0 = vmov (!%p203_p2), 683565275   ;;  %v1330_v5 = vmov (!%p203_p2), 2475754826   ;;  %s1335_s12 = smov (!%p203_p2), 125   ;;  %s1336_s13 = smov (!%p203_p2), 126  }
   0x8   : > { %v1408_v11 = vshrl.u32 (!%p203_p2), %v831_v10, 7  ;;  %v834_v35 = vand.u32 (!%p203_p2), 127, %v831_v10 }
   0xa   : > { %v838_v13 = vsub.s32 (!%p203_p2), 0, %v1408_v11  ;;  %v847_v16 = vsub.s32 (!%p203_p2), 1, %v1408_v11  ;;  %vm1424_vm0 = vcmp.lt.s32.totalorder (!%p203_p2), %v834_v35, %v1408_v11 }
   0xd   : > { %s1738_s19 = smov (!%p246_p3, %s1214_s19), 1 }
   0xe   : > { %s1378_s20 = sshll.u32 %s1738_s19, 3  ;;  %s1220_s21 = sshll.u32 %s1738_s19, 2 }
   0xf   : > { %s1385_s24 = scalar_lea.vmem %s1729_s0, %s1378_s20  ;;  %s253_s27 = scalar_lea.vmem %s1730_s1, %s1220_s21 }
  0x10   : > { %v1391_v1 = vld [vmem:[%s1385_s24] sm:$0x1f]  ;;  %s1255_s30 = smul.u32 88, %s1738_s19  ;;  %s1571_s11 = scalar_lea.vmem %s1731_s2, %s1378_s20 }
  0x11   : > { %v1393_v2 = vld [vmem:[%s253_s27] sm:$0xf]  ;;  %274 = vrot.lane.b32.xlu0 %v1391_v1, %s1322_s28  ;;  %896 = vperm.xlu1 %1290, %v1391_v1   ;;  %s1256_s14 = smul.u32 24, %s1738_s19  ;;  %s261_s22 = scalar_lea.vmem %s1732_s3, %s1378_s20 }
  0x12   : > { %v1397_v3 = vrot.slane %v1393_v2, 7  ;;  %v1400_v4 = vand.u32 2147483647, %v1393_v2  ;;  %v1413_v15 = vrot.slane %v1393_v2, %v838_v13  ;;  %v1419_v18 = vrot.slane %v1393_v2, %v847_v16  ;;  %s1491_s8 = scalar_lea.vmem %s1733_s4, %s1255_s30 }
  0x13   : > { %vm605_vm4 = vcmp.ne.f32.partialorder %v1393_v2, %v1393_v2  ;;  %vm602_vm8 = vcmp.eq.f32.partialorder %v1393_v2, 0.0  ;;  %v615_v49 = vand.u32 2147483648, %v1393_v2  ;;  %s1655_s17 = scalar_lea.vmem %s1734_s5, %s1256_s14 }
  0x14   : > { %v570_v6 = vand.u32 2147483647, %v1397_v3  ;;  %vm600_vm2 = vcmp.lt.s32.totalorder %v1397_v3, 0  ;;  %vm604_vm3 = vcmp.ne.f32.partialorder %v1397_v3, %v1397_v3  ;;  %vm597_vm5 = vcmp.lt.f32.partialorder %v1397_v3, 0.0 }
  0x15   : > { %1291 = vset.pattern.permute.xlu1 %v1324_v8  ;;  %891 = vperm.xlu0 %1289, %v1391_v1   ;;  %vm611_vm7 = vcmp.eq.s32.totalorder %v1400_v4, inf  ;;  %v601_v43 = vsel %vm600_vm2, 3.1415927, %v1327_v42  ;;  %vm606_vm9 = vmor %vm604_vm3, %vm605_vm4  ;;  %v609_v46 = vsel %vm597_vm5, 2.3561945, %v1328_v45 }
  0x16   : > { %v573_v7 = vmax.f32 %v570_v6, %v1400_v4  ;;  %965 = vperm.xlu1 %1291, %v1391_v1   ;;  %v572_v12 = vmin.f32 %v570_v6, %v1400_v4  ;;  %vm594_vm1 = vcmp.gt.f32.partialorder %v1400_v4, %v570_v6  ;;  %vm610_vm6 = vcmp.eq.s32.totalorder %v570_v6, inf }
  0x17   : > { %vm612_vm10 = vmand %vm610_vm6, %vm611_vm7 }
  0x18   : > { %1294 = vrcp.f32 %v573_v7  ;;  %v1331_v7 = vmov 2131351028  }
  0x19   : > { %1293 = vset.pattern.permute.xlu0 %v1325_v9 }
  0x1a   : > { %1292 = vset.pattern.permute.xlu1 %v1325_v9  ;;  %841 = vrot.lane.b32.xlu0 %v1413_v15, %s1326_s29  ;;  %v1332_v9 = vmov 2102212464  }
  0x1b   : > { %970 = vperm.xlu1 %1292, %v1391_v1  }
  0x1f   : > { %850 = vrot.lane.b32.xlu1 %v1419_v18, %s1326_s29 }
  0x22   : > { %v1295_v14 = vpop.eup %1294 }
  0x23   : > { %v575_v17 = vmul.f32 %v1295_v14, %v572_v12  ;;  %v1333_v12 = vmov 920167782  }
  0x25   : > { %v576_v19 = vmul.f32 %v575_v17, %v575_v17 }
  0x27   : > { %v577_v20 = vmul.f32 0.002785687, %v576_v19 }
  0x29   : > { %v578_v21 = vadd.f32 -0.015866, %v577_v20 }
  0x2b   : > { %v579_v22 = vmul.f32 %v578_v21, %v576_v19  ;;  %v1334_v21 = vmov 1326507024  }
  0x2d   : > { %v580_v23 = vadd.f32 0.04247222, %v579_v22 }
  0x2f   : > { %v581_v24 = vmul.f32 %v580_v23, %v576_v19 }
  0x31   : > { %v582_v25 = vadd.f32 -0.074975304, %v581_v24 }
  0x33   : > { %v583_v26 = vmul.f32 %v582_v25, %v576_v19 }
  0x35   : > { %v584_v27 = vadd.f32 0.1064488, %v583_v26 }
  0x37   : > { %v585_v28 = vmul.f32 %v584_v27, %v576_v19 }
  0x39   : > { %v586_v29 = vadd.f32 -0.14207031, %v585_v28 }
  0x3b   : > { %v587_v30 = vmul.f32 %v586_v29, %v576_v19 }
  0x3d   : > { %v588_v31 = vadd.f32 0.19993454, %v587_v30 }
  0x3f   : > { %v589_v32 = vmul.f32 %v588_v31, %v576_v19 }
  0x41   : > { %v590_v33 = vadd.f32 -0.33333147, %v589_v32 }
  0x43   : > { %v591_v34 = vmul.f32 %v590_v33, %v576_v19 }
  0x45   : > { %v592_v36 = vmul.f32 %v591_v34, %v575_v17 }
  0x47   : > { %v593_v38 = vadd.f32 %v592_v36, %v575_v17 }
  0x49   : > { %v595_v39 = vsub.f32 1.5707964, %v593_v38 }
  0x4b   : > { %v596_v40 = vsel %vm594_vm1, %v595_v39, %v593_v38 }
  0x4c   : > { %v598_v41 = vsub.f32 3.1415927, %v596_v40 }
  0x4e   : > { %v599_v44 = vsel %vm597_vm5, %v598_v41, %v596_v40 }
  0x4f   : > { %v603_v47 = vsel %vm602_vm8, %v601_v43, %v599_v44 }
  0x50   : > { %v607_v48 = vsel %vm606_vm9, nan, %v603_v47  ;;  %vm1025_vm9 = vcmask 28672  }
  0x51   : > { %v613_v50 = vsel %vm612_vm10, %v609_v46, %v607_v48  ;;  %1247 = vst.msk [vmem:[%s1491_s8 + $0x38] sm:$0x1f] %vm1025_vm9, %v1327_v42  ;;  %1248 = vst.msk [vmem:[%s1491_s8 + $0x40] sm:$0x1f] %vm1025_vm9, %v1327_v42 }
  0x52   : > { %v614_v51 = vand.u32 2147483647, %v613_v50 }
  0x54   : > { %v1440_v52 = vor.u32 %v615_v49, %v614_v51 }
  0x56   : > { %v620_v53 = vand.u32 2139095040, %v1440_v52  ;;  %v617_v55 = vand.u32 2147483647, %v1440_v52  ;;  %vm619_vm3 = vcmp.lt.s32.totalorder %v1440_v52, 0 }
  0x58   : > { %v621_v54 = vshrl.u32 %v620_v53, 23  ;;  %v624_v58 = vand.u32 8388607, %v617_v55  ;;  %vm618_vm4 = vcmp.le.f32.partialorder %v617_v55, 0.7853982 }
  0x5a   : > { %v1233_v56 = vadd.s32 4294967169, %v621_v54  ;;  %v625_v61 = vor.u32 8388608, %v624_v58 }
  0x5c   : > { %v627_v57 = vadd.s32 1, %v1233_v56  ;;  %v665_v23 = vshll.u32 %v625_v61, 8  ;;  %v1467_v61 = vand.u32 2147483647, %v1391_v1 }
  0x5e   : > { %vm628_vm11 = vcmp.gt.s32.totalorder %v627_v57, 0 }
  0x5f   : > { %v629_v59 = vsel %vm628_vm11, %v627_v57, 0 }
  0x60   : > { %v631_v60 = vand.u32 31, %v629_v59  ;;  %v630_v62 = vshrl.u32 %v629_v59, 5 }
  0x62   : > { %v632_v63 = vsub.s32 32, %v631_v60  ;;  %v634_v4 = vshll.u32 %v1329_v0, %v631_v60  ;;  %v637_v6 = vshll.u32 %v1330_v5, %v631_v60  ;;  %v640_v8 = vshll.u32 %v1331_v7, %v631_v60 }
  0x63   : > { %v643_v10 = vshll.u32 %v1332_v9, %v631_v60  ;;  %v646_v13 = vshll.u32 %v1333_v12, %v631_v60  ;;  %vm649_vm12 = vcmp.lt.s32.totalorder %v630_v62, 1  ;;  %vm652_vm13 = vcmp.lt.s32.totalorder %v630_v62, 4 }
  0x64   : > { %v633_v14 = vshrl.u32 %v1329_v0, %v632_v63  ;;  %v635_v16 = vshrl.u32 %v1330_v5, %v632_v63  ;;  %v638_v17 = vshrl.u32 %v1331_v7, %v632_v63  ;;  %v641_v19 = vshrl.u32 %v1332_v9, %v632_v63 }
  0x65   : > { %v644_v20 = vshrl.u32 %v1333_v12, %v632_v63  ;;  %v647_v22 = vshrl.u32 %v1334_v21, %v632_v63  ;;  %vm650_vm14 = vcmp.lt.s32.totalorder %v630_v62, 2  ;;  %vm651_vm15 = vcmp.lt.s32.totalorder %v630_v62, 3 }
  0x66   : > { %v636_v24 = vor.u32 %v635_v16, %v634_v4  ;;  %v639_v25 = vor.u32 %v638_v17, %v637_v6  ;;  %v642_v26 = vor.u32 %v641_v19, %v640_v8 }
  0x67   : > { %v645_v27 = vor.u32 %v644_v20, %v643_v10  ;;  %v648_v28 = vor.u32 %v647_v22, %v646_v13 }
  0x68   : > { %v653_v29 = vsel %vm649_vm12, %v633_v14, %v636_v24  ;;  %v654_v30 = vsel %vm652_vm13, %v642_v26, 2102212464  ;;  %v657_v31 = vsel %vm649_vm12, %v636_v24, %v639_v25  ;;  %v661_v32 = vsel %vm649_vm12, %v639_v25, %v642_v26 }
  0x69   : > { %v655_v33 = vsel %vm651_vm15, %v639_v25, %v654_v30  ;;  %v658_v34 = vsel %vm652_vm13, %v645_v27, 920167782  ;;  %v662_v35 = vsel %vm652_vm13, %v648_v28, 1326507024  ;;  %vm709_vm12 = vweird.f32 %v1440_v52 }
  0x6a   : > { %v659_v36 = vsel %vm651_vm15, %v642_v26, %v658_v34  ;;  %v663_v38 = vsel %vm651_vm15, %v645_v27, %v662_v35  ;;  %v656_v39 = vsel %vm650_vm14, %v653_v29, %v655_v33  ;;  %vm309_vm15 = vcmp.eq.f32.partialorder %v1391_v1, 0.0 }
  0x6b   : > { %v660_v40 = vsel %vm650_vm14, %v657_v31, %v659_v36  ;;  %v664_v41 = vsel %vm650_vm14, %v661_v32, %v663_v38  ;;  %v672_v48 = vmul.u32 %v665_v23, %v656_v39 }
  0x6c   : > { %v1457_v43 = vmul.u32.u64.low %v665_v23, %v664_v41  ;;  %v1458_v44 = vmul.u32.u64.high %v665_v23, %v664_v41, %v1457_v43  ;;  %v1460_v46 = vmul.u32.u64.low %v665_v23, %v660_v40  ;;  %v1461_v47 = vmul.u32.u64.high %v665_v23, %v660_v40, %v1460_v46 }
  0x6e   : > { %vm674_vm1 = vc.u32 %v1458_v44, %v1460_v46  ;;  %v675_v49 = vadd.s32 1, %v1461_v47  ;;  %v673_v8 = vadd.s32 %v1460_v46, %v1458_v44 }
  0x70   : > { %v676_v50 = vsel %vm674_vm1, %v675_v49, %v1461_v47 }
  0x71   : > { %v677_v51 = vadd.s32 %v676_v50, %v672_v48 }
  0x73   : > { %v678_v53 = vadd.s32 536870912, %v677_v51 }
  0x75   : > { %v679_v54 = vshrl.u32 %v678_v53, 30 }
  0x77   : > { %v680_v56 = vshll.u32 %v679_v54, 30  ;;  %v703_v26 = vsub.s32 4, %v679_v54 }
  0x79   : > { %v681_v57 = vsub.s32 %v677_v51, %v680_v56  ;;  %v704_v32 = vsel %vm619_vm3, %v703_v26, %v679_v54  ;;  %v856_v54 = vsub.s32 3, %v1408_v11 }
  0x7a   : > { %v706_v38 = vsel %vm618_vm4, 0, %v704_v32 }
  0x7b   : > { %v683_v58 = vsub.s32 0, %v681_v57  ;;  %v813_v40 = vadd.s32 3, %v706_v38  ;;  %v710_v46 = vand.u32 3, %v706_v38 }
  0x7d   : > { %v1234_v59 = vmin.u32 %v683_v58, %v681_v57  ;;  %v814_v44 = vand.u32 3, %v813_v40  ;;  %vm712_vm6 = vcmp.eq.s32.totalorder %v710_v46, 0  ;;  %vm715_vm7 = vcmp.eq.s32.totalorder %v710_v46, 2 }
  0x7e   : > { %vm711_vm11 = vcmp.lt.s32.totalorder %v710_v46, 2 }
  0x7f   : > { %v685_v60 = vclz %v1234_v59  ;;  %vm819_vm5 = vcmp.eq.s32.totalorder %v814_v44, 2  ;;  %vm816_vm8 = vcmp.eq.s32.totalorder %v814_v44, 0  ;;  %vm815_vm10 = vcmp.lt.s32.totalorder %v814_v44, 2 }
  0x81   : > { %v1235_v62 = vadd.s32 4294967294, %v685_v60 }
  0x83   : > { %v1469_v63 = vpop.permute.xlu0 %274  ;;  %vm1236_vm2 = vcmp.lt.s32.totalorder %v1235_v62, 0 }
  0x84   : > { %v1472_v4 = vand.u32 2147483647, %v1469_v63  ;;  %v688_v10 = vsel %vm1236_vm2, 0, %v1235_v62  ;;  %vm307_vm14 = vcmp.lt.s32.totalorder %v1469_v63, 0  ;;  %vm311_vm1 = vcmp.ne.f32.partialorder %v1469_v63, %v1469_v63 }
  0x85   : > { %v689_v13 = vsub.s32 32, %v688_v10  ;;  %v690_v14 = vshll.u32 %v681_v57, %v688_v10  ;;  %v693_v16 = vsub.s32 4294967266, %v688_v10  ;;  %vm312_vm2 = vcmp.ne.f32.partialorder %v1391_v1, %v1391_v1 }
  0x86   : > { %v280_v6 = vmax.f32 %v1472_v4, %v1467_v61  ;;  %v279_v27 = vmin.f32 %v1472_v4, %v1467_v61  ;;  %vm301_vm13 = vcmp.gt.f32.partialorder %v1467_v61, %v1472_v4 }
  0x87   : > { %v691_v17 = vshrl.u32 %v673_v8, %v689_v13  ;;  %v694_v19 = vadd.s32 127, %v693_v16 }
  0x88   : > { %1296 = vrcp.f32 %v280_v6 }
  0x89   : > { %v692_v20 = vor.u32 %v691_v17, %v690_v14  ;;  %v695_v22 = vshll.u32 %v694_v19, 23 }
  0x8b   : > { %v696_v23 = vor.u32 4788187, %v695_v22  ;;  %v699_v24 = vcvt.s32.f32 %v692_v20 }
  0x8d   : > { %v697_v25 = vand.u32 2147483647, %v696_v23 }
  0x8f   : > { %v700_v29 = vmul.f32 %v699_v24, %v697_v25 }
  0x91   : > { %v701_v31 = vxor.u32 2147483648, %v700_v29 }
  0x92   : > { %v1297_v28 = vpop.eup %1296 }
  0x93   : > { %v1479_v30 = vmul.f32 %v1297_v28, %v279_v27  ;;  %v702_v34 = vsel %vm619_vm3, %v701_v31, %v700_v29  ;;  %vm304_vm3 = vcmp.lt.f32.partialorder %v1469_v63, 0.0 }
  0x94   : > { %v705_v36 = vsel %vm618_vm4, %v1440_v52, %v702_v34  ;;  %vm317_vm4 = vcmp.eq.s32.totalorder %v1472_v4, inf  ;;  %v316_v40 = vsel %vm304_vm3, 2.3561945, %v1328_v45 }
  0x95   : > { %v283_v33 = vmul.f32 %v1479_v30, %v1479_v30  ;;  %1298 = vcosq.f32 %v705_v36 }
  0x96   : > { %1300 = vsinq.f32 %v705_v36 }
  0x97   : > { %v284_v35 = vmul.f32 0.002785687, %v283_v33 }
  0x99   : > { %v285_v39 = vadd.f32 -0.015866, %v284_v35 }
  0x9b   : > { %v286_v41 = vmul.f32 %v285_v39, %v283_v33 }
  0x9d   : > { %v287_v43 = vadd.f32 0.04247222, %v286_v41  ;;  %v322_v41 = vand.u32 2147483648, %v1391_v1 }
  0x9f   : > { %v288_v55 = vmul.f32 %v287_v43, %v283_v33  ;;  %v1299_v48 = vpop.eup %1298 }
  0xa0   : > { %v1301_v49 = vpop.eup %1300  ;;  %v716_v51 = vxor.u32 2147483648, %v1299_v48 }
  0xa1   : > { %v289_v47 = vadd.f32 -0.074975304, %v288_v55  ;;  %v713_v53 = vxor.u32 2147483648, %v1301_v49 }
  0xa2   : > { %v821_v57 = vsel %vm819_vm5, %v716_v51, %v1301_v49  ;;  %v717_v58 = vsel %vm715_vm7, %v716_v51, %v1301_v49  ;;  %vm318_vm5 = vcmp.eq.s32.totalorder %v1467_v61, inf }
  0xa3   : > { %v290_v50 = vmul.f32 %v289_v47, %v283_v33  ;;  %v818_v59 = vsel %vm816_vm8, %v1299_v48, %v713_v53  ;;  %v714_v60 = vsel %vm712_vm6, %v1299_v48, %v713_v53  ;;  %vm313_vm6 = vmor %vm311_vm1, %vm312_vm2 }
  0xa4   : > { %v822_v6 = vsel %vm815_vm10, %v818_v59, %v821_v57  ;;  %v718_v11 = vsel %vm711_vm11, %v714_v60, %v717_v58  ;;  %vm319_vm7 = vmand %vm317_vm4, %vm318_vm5 }
  0xa5   : > { %v291_v56 = vadd.f32 0.1064488, %v290_v50  ;;  %v823_v8 = vsel %vm709_vm12, nan, %v822_v6  ;;  %v719_v10 = vsel %vm709_vm12, nan, %v718_v11 }
  0xa6   : > { %v827_v14 = vsub.f32 0.0, %v823_v8  ;;  %v1504_v16 = vrot.slane %v823_v8, %v856_v54  ;;  %v1506_v17 = vrot.slane %v719_v10, %v856_v54  ;;  %v829_v52 = vmul.f32 %v719_v10, %v1393_v2 }
  0xa7   : > { %v292_v62 = vmul.f32 %v291_v56, %v283_v33  ;;  %v824_v19 = vmul.f32 %v719_v10, %v1397_v3  ;;  %v825_v20 = vmul.f32 %v823_v8, %v1393_v2 }
  0xa8   : > { %868 = vrot.lane.b32.xlu0 %v1504_v16, %s1326_s29  ;;  %859 = vrot.lane.b32.xlu1 %v1506_v17, %s1326_s29  ;;  %v828_v23 = vmul.f32 %v827_v14, %v1397_v3 }
  0xa9   : > { %v293_v13 = vadd.f32 -0.14207031, %v292_v62  ;;  %v826_v24 = vadd.f32 %v825_v20, %v824_v19 }
  0xaa   : > { %v830_v26 = vadd.f32 %v829_v52, %v828_v23 }
  0xab   : > { %v294_v22 = vmul.f32 %v293_v13, %v283_v33  ;;  %v1516_v27 = vrot.slane %v826_v24, %v856_v54 }
  0xac   : > { %v1518_v29 = vrot.slane %v830_v26, %v856_v54 }
  0xad   : > { %v295_v25 = vadd.f32 0.19993454, %v294_v22 }
  0xaf   : > { %v296_v28 = vmul.f32 %v295_v25, %v283_v33 }
  0xb1   : > { %v297_v31 = vadd.f32 -0.33333147, %v296_v28 }
  0xb3   : > { %v298_v32 = vmul.f32 %v297_v31, %v283_v33  ;;  %v308_v33 = vsel %vm307_vm14, 3.1415927, %v1327_v42 }
  0xb5   : > { %v299_v2 = vmul.f32 %v298_v32, %v1479_v30 }
  0xb7   : > { %v300_v34 = vadd.f32 %v299_v2, %v1479_v30 }
  0xb9   : > { %v302_v35 = vsub.f32 1.5707964, %v300_v34 }
  0xbb   : > { %v303_v36 = vsel %vm301_vm13, %v302_v35, %v300_v34 }
  0xbc   : > { %v305_v3 = vsub.f32 3.1415927, %v303_v36 }
  0xbe   : > { %v306_v30 = vsel %vm304_vm3, %v305_v3, %v303_v36  ;;  %vm538_vm3 = vcmask 12288  }
  0xbf   : > { %v310_v38 = vsel %vm309_vm15, %v308_v33, %v306_v30  ;;  %539 = vst.msk [vmem:[%s1571_s11] sm:$0x1f] %vm538_vm3, %v1327_v42 }
  0xc0   : > { %v314_v39 = vsel %vm313_vm6, nan, %v310_v38 }
  0xc1   : > { %v320_v43 = vsel %vm319_vm7, %v316_v40, %v314_v39 }
  0xc2   : > { %v321_v44 = vand.u32 2147483647, %v320_v43 }
  0xc4   : > { %v1536_v46 = vor.u32 %v322_v41, %v321_v44 }
  0xc6   : > { %v327_v55 = vand.u32 2139095040, %v1536_v46  ;;  %v324_v48 = vand.u32 2147483647, %v1536_v46  ;;  %vm326_vm1 = vcmp.lt.s32.totalorder %v1536_v46, 0 }
  0xc8   : > { %v328_v4 = vshrl.u32 %v327_v55, 23  ;;  %v331_v51 = vand.u32 8388607, %v324_v48  ;;  %vm325_vm2 = vcmp.le.f32.partialorder %v324_v48, 0.7853982 }
  0xca   : > { %v1225_v47 = vadd.s32 4294967169, %v328_v4  ;;  %v332_v13 = vor.u32 8388608, %v331_v51 }
  0xcc   : > { %v334_v61 = vadd.s32 1, %v1225_v47 }
  0xce   : > { %vm335_vm8 = vcmp.gt.s32.totalorder %v334_v61, 0 }
  0xcf   : > { %v336_v49 = vsel %vm335_vm8, %v334_v61, 0 }
  0xd0   : > { %v338_v50 = vand.u32 31, %v336_v49  ;;  %v337_v54 = vshrl.u32 %v336_v49, 5 }
  0xd2   : > { %v339_v53 = vsub.s32 32, %v338_v50  ;;  %v341_v56 = vshll.u32 %v1329_v0, %v338_v50  ;;  %v344_v57 = vshll.u32 %v1330_v5, %v338_v50  ;;  %v347_v60 = vshll.u32 %v1331_v7, %v338_v50 }
  0xd3   : > { %v350_v6 = vshll.u32 %v1332_v9, %v338_v50  ;;  %v353_v8 = vshll.u32 %v1333_v12, %v338_v50  ;;  %vm356_vm10 = vcmp.lt.s32.totalorder %v337_v54, 1  ;;  %vm359_vm11 = vcmp.lt.s32.totalorder %v337_v54, 4 }
  0xd4   : > { %v342_v58 = vshrl.u32 %v1330_v5, %v339_v53  ;;  %v345_v59 = vshrl.u32 %v1331_v7, %v339_v53  ;;  %v348_v62 = vshrl.u32 %v1332_v9, %v339_v53  ;;  %v351_v11 = vshrl.u32 %v1333_v12, %v339_v53 }
  0xd5   : > { %v354_v10 = vshrl.u32 %v1334_v21, %v339_v53  ;;  %v340_v24 = vshrl.u32 %v1329_v0, %v339_v53  ;;  %vm358_vm12 = vcmp.lt.s32.totalorder %v337_v54, 3  ;;  %vm357_vm13 = vcmp.lt.s32.totalorder %v337_v54, 2 }
  0xd6   : > { %v343_v14 = vor.u32 %v342_v58, %v341_v56  ;;  %v346_v52 = vor.u32 %v345_v59, %v344_v57  ;;  %v349_v19 = vor.u32 %v348_v62, %v347_v60  ;;  %v352_v20 = vor.u32 %v351_v11, %v350_v6 }
  0xd7   : > { %v355_v5 = vor.u32 %v354_v10, %v353_v8  ;;  %v372_v21 = vshll.u32 %v332_v13, 8  ;;  %v897_v13 = vpop.permute.xlu1 %896 }
  0xd8   : > { %v361_v22 = vsel %vm359_vm11, %v349_v19, 2102212464  ;;  %v364_v7 = vsel %vm356_vm10, %v343_v14, %v346_v52  ;;  %v368_v23 = vsel %vm356_vm10, %v346_v52, %v349_v19  ;;  %v365_v9 = vsel %vm359_vm11, %v352_v20, 920167782 }
  0xd9   : > { %v369_v25 = vsel %vm359_vm11, %v355_v5, 1326507024  ;;  %v366_v12 = vsel %vm358_vm12, %v349_v19, %v365_v9  ;;  %v360_v28 = vsel %vm356_vm10, %v340_v24, %v343_v14  ;;  %v362_v31 = vsel %vm358_vm12, %v346_v52, %v361_v22  ;;  %v892_v24 = vpop.permute.xlu0 %891 }
  0xda   : > { %v370_v26 = vsel %vm358_vm12, %v352_v20, %v369_v25  ;;  %v367_v32 = vsel %vm357_vm13, %v364_v7, %v366_v12  ;;  %v363_v30 = vsel %vm357_vm13, %v360_v28, %v362_v31  ;;  %vm416_vm11 = vweird.f32 %v1536_v46 }
  0xdb   : > { %v371_v2 = vsel %vm357_vm13, %v368_v23, %v370_v26  ;;  %v1556_v36 = vmul.u32.u64.low %v372_v21, %v367_v32  ;;  %v1557_v3 = vmul.u32.u64.high %v372_v21, %v367_v32, %v1556_v36  ;;  %v379_v33 = vmul.u32 %v372_v21, %v363_v30  ;;  %v966_v5 = vpop.permute.xlu1 %965 }
  0xdc   : > { %v1553_v34 = vmul.u32.u64.low %v372_v21, %v371_v2  ;;  %v1554_v35 = vmul.u32.u64.high %v372_v21, %v371_v2, %v1553_v34 }
  0xdd   : > { %v382_v0 = vadd.s32 1, %v1557_v3  ;;  %v842_v2 = vpop.permute.xlu0 %841 }
  0xde   : > { %vm381_vm14 = vc.u32 %v1554_v35, %v1556_v36  ;;  %v380_v50 = vadd.s32 %v1556_v36, %v1554_v35  ;;  %v844_v36 = vsel %vm1424_vm0, %v1413_v15, %v842_v2 }
  0xdf   : > { %v383_v38 = vsel %vm381_vm14, %v382_v0, %v1557_v3  ;;  %v971_v25 = vpop.permute.xlu1 %970 }
  0xe0   : > { %v384_v39 = vadd.s32 %v383_v38, %v379_v33 }
  0xe2   : > { %v385_v40 = vadd.s32 536870912, %v384_v39 }
  0xe3   : > { %v851_v0 = vpop.permute.xlu1 %850 }
  0xe4   : > { %v386_v41 = vshrl.u32 %v385_v40, 30  ;;  %v894_v40 = vsub.f32 %v892_v24, %v844_v36 }
  0xe6   : > { %v387_v43 = vshll.u32 %v386_v41, 30  ;;  %v410_v8 = vsub.s32 4, %v386_v41 }
  0xe8   : > { %v388_v44 = vsub.s32 %v384_v39, %v387_v43  ;;  %v411_v52 = vsel %vm326_vm1, %v410_v8, %v386_v41 }
  0xe9   : > { %v413_v20 = vsel %vm325_vm2, 0, %v411_v52 }
  0xea   : > { %v390_v55 = vsub.s32 0, %v388_v44  ;;  %v520_v22 = vadd.s32 3, %v413_v20  ;;  %v417_v23 = vand.u32 3, %v413_v20 }
  0xec   : > { %v1226_v4 = vmin.u32 %v390_v55, %v388_v44  ;;  %v521_v7 = vand.u32 3, %v520_v22  ;;  %vm422_vm5 = vcmp.eq.s32.totalorder %v417_v23, 2  ;;  %vm419_vm7 = vcmp.eq.s32.totalorder %v417_v23, 0 }
  0xed   : > { %vm418_vm10 = vcmp.lt.s32.totalorder %v417_v23, 2 }
  0xee   : > { %v392_v47 = vclz %v1226_v4  ;;  %vm526_vm4 = vcmp.eq.s32.totalorder %v521_v7, 2  ;;  %vm523_vm6 = vcmp.eq.s32.totalorder %v521_v7, 0  ;;  %vm522_vm8 = vcmp.lt.s32.totalorder %v521_v7, 2 }
  0xf0   : > { %v1227_v61 = vadd.s32 4294967294, %v392_v47 }
  0xf2   : > { %vm1228_vm15 = vcmp.lt.s32.totalorder %v1227_v61, 0 }
  0xf3   : > { %v395_v49 = vsel %vm1228_vm15, 0, %v1227_v61 }
  0xf4   : > { %v396_v51 = vsub.s32 32, %v395_v49  ;;  %v400_v53 = vsub.s32 4294967266, %v395_v49  ;;  %v397_v54 = vshll.u32 %v388_v44, %v395_v49 }
  0xf6   : > { %v398_v56 = vshrl.u32 %v380_v50, %v396_v51  ;;  %v401_v57 = vadd.s32 127, %v400_v53 }
  0xf8   : > { %v399_v58 = vor.u32 %v398_v56, %v397_v54  ;;  %v402_v59 = vshll.u32 %v401_v57, 23 }
  0xfa   : > { %v403_v60 = vor.u32 4788187, %v402_v59  ;;  %v406_v6 = vcvt.s32.f32 %v399_v58 }
  0xfc   : > { %v404_v62 = vand.u32 2147483647, %v403_v60 }
  0xfe   : > { %v407_v11 = vmul.f32 %v406_v6, %v404_v62 }
 0x100   : > { %v408_v10 = vxor.u32 2147483648, %v407_v11 }
 0x102   : > { %v409_v14 = vsel %vm326_vm1, %v408_v10, %v407_v11 }
 0x103   : > { %v412_v19 = vsel %vm325_vm2, %v1536_v46, %v409_v14  ;;  %v853_v46 = vsel %vm1424_vm0, %v1419_v18, %v851_v0 }
 0x104   : > { %1302 = vcosq.f32 %v412_v19  ;;  %v899_v41 = vsub.f32 %v897_v13, %v853_v46 }
 0x105   : > { %1304 = vsinq.f32 %v412_v19 }
 0x10e   : > { %v1303_v9 = vpop.eup %1302 }
 0x10f   : > { %v1305_v48 = vpop.eup %1304  ;;  %v423_v12 = vxor.u32 2147483648, %v1303_v9 }
 0x110   : > { %v420_v26 = vxor.u32 2147483648, %v1305_v48 }
 0x111   : > { %v528_v21 = vsel %vm526_vm4, %v423_v12, %v1305_v48  ;;  %v424_v28 = vsel %vm422_vm5, %v423_v12, %v1305_v48 }
 0x112   : > { %v525_v31 = vsel %vm523_vm6, %v1303_v9, %v420_v26  ;;  %v421_v32 = vsel %vm419_vm7, %v1303_v9, %v420_v26 }
 0x113   : > { %v529_v34 = vsel %vm522_vm8, %v525_v31, %v528_v21  ;;  %v425_v35 = vsel %vm418_vm10, %v421_v32, %v424_v28 }
 0x114   : > { %v1579_v3 = vsel %vm416_vm11, nan, %v529_v34  ;;  %v1581_v30 = vsel %vm416_vm11, nan, %v425_v35 }
 0x115   : > { %561 = vrot.lane.b32.xlu1 %v1579_v3, %s1326_s29  ;;  %v532_v33 = vmul.f32 %v1579_v3, %v1391_v1  ;;  %549 = vrot.lane.b32.xlu0 %v1581_v30, %s1335_s12  ;;  %v531_v15 = vmul.f32 %v1581_v30, %v1469_v63  ;;  %v534_v38 = vsub.f32 0.0, %v1579_v3 }
 0x117   : > { %v533_v39 = vadd.f32 %v532_v33, %v531_v15 }
 0x119   : > { %555 = vrot.lane.b32.xlu1 %v534_v38, %s1336_s13  ;;  %541 = vrot.lane.b32.xlu0 %v533_v39, %s1326_s29 }
 0x11a   : > { %v869_v1 = vpop.permute.xlu0 %868  ;;  %v860_v43 = vpop.permute.xlu1 %859 }
 0x11b   : > { %v871_v18 = vsel %vm1424_vm0, %v1504_v16, %v869_v1  ;;  %v862_v44 = vsel %vm1424_vm0, %v1506_v17, %v860_v43 }
 0x11c   : > { %v901_v55 = vmul.f32 %v899_v41, %v871_v18  ;;  %v903_v4 = vsub.f32 0.0, %v871_v18  ;;  %v973_v47 = vmul.f32 %v971_v25, %v871_v18  ;;  %v900_v61 = vmul.f32 %v894_v40, %v862_v44 }
 0x11d   : > { %v905_v49 = vmul.f32 %v899_v41, %v862_v44  ;;  %v968_v50 = vmul.f32 %v966_v5, %v862_v44  ;;  %v976_v51 = vmul.f32 %v971_v25, %v862_v44  ;;  %886 = vrot.lane.b32.xlu1 %v1518_v29, %s1326_s29  ;;  %877 = vrot.lane.b32.xlu0 %v1516_v27, %s1326_s29 }
 0x11e   : > { %v904_v16 = vmul.f32 %v903_v4, %v894_v40  ;;  %v975_v53 = vmul.f32 %v966_v5, %v903_v4  ;;  %v1607_v17 = vadd.f32 %v901_v55, %v900_v61 }
 0x11f   : > { %v1609_v54 = vadd.f32 %v973_v47, %v968_v50 }
 0x120   : > { %v1611_v56 = vadd.f32 %v905_v49, %v904_v16  ;;  %v907_v57 = vmul.f32 %v1607_v17, %v1607_v17  ;;  %v1616_v58 = vand.u32 2147483647, %v1607_v17  ;;  %1026 = vst.msk [vmem:[%s1491_s8] sm:$0x1f] %vm1025_vm9, %v1607_v17  ;;  %v1621_v59 = vadd.f32 %v976_v51, %v975_v53 }
 0x121   : > { %1245 = vst.msk [vmem:[%s1491_s8 + $0x28] sm:$0x1f] %vm1025_vm9, %v1609_v54  ;;  %v1635_v6 = vand.u32 2147483647, %v1609_v54  ;;  %vm944_vm14 = vcmp.lt.f32.partialorder %v1607_v17, 0.0  ;;  %vm947_vm15 = vcmp.lt.s32.totalorder %v1607_v17, 0  ;;  %vm951_vm2 = vcmp.ne.f32.partialorder %v1607_v17, %v1607_v17 }
 0x122   : > { %v908_v60 = vmul.f32 %v1611_v56, %v1611_v56  ;;  %v1629_v62 = vand.u32 2147483647, %v1611_v56  ;;  %1241 = vst.msk [vmem:[%s1491_s8 + $0x8] sm:$0x1f] %vm1025_vm9, %v1611_v56  ;;  %1246 = vst.msk [vmem:[%s1491_s8 + $0x30] sm:$0x1f] %vm1025_vm9, %v1621_v59  ;;  %vm952_vm4 = vcmp.ne.f32.partialorder %v1611_v56, %v1611_v56  ;;  %vm1012_vm10 = vcmp.ne.f32.partialorder %v1609_v54, %v1609_v54 }
 0x123   : > { %v1643_v10 = vand.u32 2147483647, %v1621_v59  ;;  %vm949_vm3 = vcmp.eq.f32.partialorder %v1611_v56, 0.0  ;;  %vm957_vm6 = vcmp.eq.s32.totalorder %v1616_v58, inf  ;;  %vm1008_vm8 = vcmp.lt.s32.totalorder %v1609_v54, 0 }
 0x124   : > { %v909_v11 = vadd.f32 %v908_v60, %v907_v57  ;;  %v920_v8 = vmax.f32 %v1616_v58, %v1629_v62  ;;  %v919_v14 = vmin.f32 %v1616_v58, %v1629_v62  ;;  %vm941_vm1 = vcmp.gt.f32.partialorder %v1629_v62, %v1616_v58 }
 0x125   : > { %v981_v13 = vmax.f32 %v1635_v6, %v1643_v10  ;;  %v980_v20 = vmin.f32 %v1635_v6, %v1643_v10  ;;  %vm1002_vm5 = vcmp.gt.f32.partialorder %v1643_v10, %v1635_v6  ;;  %vm958_vm7 = vcmp.eq.s32.totalorder %v1629_v62, inf }
 0x126   : > { %1306 = vrsqrt.f32 %v909_v11  ;;  %vm912_vm12 = vcmp.eq.f32.partialorder %v909_v11, inf  ;;  %v915_v19 = vand.u32 2147483648, %v909_v11  ;;  %vm914_vm13 = vcmp.eq.f32.partialorder %v909_v11, 0.0 }
 0x127   : > { %1308 = vrcp.f32 %v920_v8  ;;  %vm1013_vm11 = vcmp.ne.f32.partialorder %v1621_v59, %v1621_v59 }
 0x128   : > { %1310 = vrcp.f32 %v981_v13 }
 0x130   : > { %v1307_v52 = vpop.eup %1306 }
 0x131   : > { %v1309_v5 = vpop.eup %1308  ;;  %v911_v22 = vmul.f32 %v1307_v52, %v909_v11 }
 0x132   : > { %v922_v7 = vmul.f32 %v1309_v5, %v919_v14  ;;  %v1311_v23 = vpop.eup %1310 }
 0x133   : > { %v913_v24 = vsel %vm912_vm12, %v909_v11, %v911_v22  ;;  %v983_v48 = vmul.f32 %v1311_v23, %v980_v20  ;;  %v956_v20 = vsel %vm944_vm14, 2.3561945, %v1328_v45  ;;  %vm953_vm12 = vmor %vm951_vm2, %vm952_vm4  ;;  %vm552_vm4 = vcmask 4096  }
 0x134   : > { %v916_v9 = vsel %vm914_vm13, %v915_v19, %v913_v24  ;;  %v923_v25 = vmul.f32 %v922_v7, %v922_v7  ;;  %v948_v19 = vsel %vm947_vm15, 3.1415927, %v1327_v42  ;;  %vm1005_vm13 = vcmp.lt.f32.partialorder %v1609_v54, 0.0  ;;  %vm1014_vm2 = vmor %vm1012_vm10, %vm1013_vm11 }
 0x135   : > { %1243 = vst.msk [vmem:[%s1491_s8 + $0x18] sm:$0x1f] %vm1025_vm9, %v916_v9  ;;  %1251 = vst.msk [vmem:[%s1655_s17 + $0x8] sm:$0x1f] %vm1025_vm9, %v916_v9  ;;  %v984_v26 = vmul.f32 %v983_v48, %v983_v48  ;;  %vm1018_vm15 = vcmp.eq.s32.totalorder %v1635_v6, inf  ;;  %v962_v6 = vand.u32 2147483648, %v1611_v56 }
 0x136   : > { %v924_v12 = vmul.f32 0.002785687, %v923_v25 }
 0x137   : > { %v985_v28 = vmul.f32 0.002785687, %v984_v26 }
 0x138   : > { %v925_v21 = vadd.f32 -0.015866, %v924_v12 }
 0x139   : > { %v986_v32 = vadd.f32 -0.015866, %v985_v28  ;;  %v1023_v28 = vand.u32 2147483648, %v1621_v59 }
 0x13a   : > { %v926_v31 = vmul.f32 %v925_v21, %v923_v25 }
 0x13b   : > { %v987_v34 = vmul.f32 %v986_v32, %v984_v26  ;;  %v1312_v32 = vld [vmem:[%s1385_s24] sm:$0x1f] }
 0x13c   : > { %v927_v2 = vadd.f32 0.04247222, %v926_v31 }
 0x13d   : > { %v988_v36 = vadd.f32 0.04247222, %v987_v34 }
 0x13e   : > { %v928_v35 = vmul.f32 %v927_v2, %v923_v25  ;;  %v536_v2 = vmul.f32 %v1312_v32, %v1581_v30 }
 0x13f   : > { %v989_v33 = vmul.f32 %v988_v36, %v984_v26 }
 0x140   : > { %v929_v0 = vadd.f32 -0.074975304, %v928_v35 }
 0x141   : > { %v990_v15 = vadd.f32 -0.074975304, %v989_v33 }
 0x142   : > { %v930_v46 = vmul.f32 %v929_v0, %v923_v25 }
 0x143   : > { %v991_v40 = vmul.f32 %v990_v15, %v984_v26 }
 0x144   : > { %v931_v39 = vadd.f32 0.1064488, %v930_v46 }
 0x145   : > { %v992_v1 = vadd.f32 0.1064488, %v991_v40 }
 0x146   : > { %v932_v41 = vmul.f32 %v931_v39, %v923_v25 }
 0x147   : > { %v993_v18 = vmul.f32 %v992_v1, %v984_v26 }
 0x148   : > { %v933_v43 = vadd.f32 -0.14207031, %v932_v41 }
 0x149   : > { %v994_v55 = vadd.f32 -0.14207031, %v993_v18 }
 0x14a   : > { %v934_v44 = vmul.f32 %v933_v43, %v923_v25 }
 0x14b   : > { %v995_v47 = vmul.f32 %v994_v55, %v984_v26 }
 0x14c   : > { %v935_v4 = vadd.f32 0.19993454, %v934_v44 }
 0x14d   : > { %v996_v49 = vadd.f32 0.19993454, %v995_v47 }
 0x14e   : > { %v936_v61 = vmul.f32 %v935_v4, %v923_v25 }
 0x14f   : > { %v997_v51 = vmul.f32 %v996_v49, %v984_v26 }
 0x150   : > { %v937_v50 = vadd.f32 -0.33333147, %v936_v61 }
 0x151   : > { %v998_v53 = vadd.f32 -0.33333147, %v997_v51 }
 0x152   : > { %v938_v16 = vmul.f32 %v937_v50, %v923_v25  ;;  %v1009_v25 = vsel %vm1008_vm8, 3.1415927, %v1327_v42  ;;  %vm546_vm8 = vcmask 28696  }
 0x153   : > { %v999_v60 = vmul.f32 %v998_v53, %v984_v26 }
 0x154   : > { %v939_v57 = vmul.f32 %v938_v16, %v922_v7 }
 0x155   : > { %v1000_v8 = vmul.f32 %v999_v60, %v983_v48 }
 0x156   : > { %v940_v11 = vadd.f32 %v939_v57, %v922_v7 }
 0x157   : > { %v1001_v14 = vadd.f32 %v1000_v8, %v983_v48 }
 0x158   : > { %v942_v13 = vsub.f32 1.5707964, %v940_v11 }
 0x159   : > { %v1003_v5 = vsub.f32 1.5707964, %v1001_v14 }
 0x15a   : > { %v943_v52 = vsel %vm941_vm1, %v942_v13, %v940_v11  ;;  %vm1019_vm1 = vcmp.eq.s32.totalorder %v1643_v10, inf  ;;  %v1017_v10 = vsel %vm1005_vm13, 2.3561945, %v1328_v45  ;;  %v535_v45 = vmul.f32 %v534_v38, %v1469_v63 }
 0x15b   : > { %v945_v22 = vsub.f32 3.1415927, %v943_v52  ;;  %v1004_v7 = vsel %vm1002_vm5, %v1003_v5, %v1001_v14  ;;  %vm1010_vm5 = vcmp.eq.f32.partialorder %v1621_v59, 0.0 }
 0x15c   : > { %v1006_v24 = vsub.f32 3.1415927, %v1004_v7  ;;  %v537_v34 = vadd.f32 %v536_v2, %v535_v45 }
 0x15d   : > { %v946_v23 = vsel %vm944_vm14, %v945_v22, %v943_v52  ;;  %vm959_vm14 = vmand %vm957_vm6, %vm958_vm7  ;;  %vm544_vm6 = vcmask 20496   ;;  %vm558_vm7 = vcmask 12296  }
 0x15e   : > { %v950_v9 = vsel %vm949_vm3, %v948_v19, %v946_v23  ;;  %v1007_v62 = vsel %vm1005_vm13, %v1006_v24, %v1004_v7  ;;  %vm1020_vm3 = vmand %vm1018_vm15, %vm1019_vm1 }
 0x15f   : > { %v954_v58 = vsel %vm953_vm12, nan, %v950_v9  ;;  %v1011_v17 = vsel %vm1010_vm5, %v1009_v25, %v1007_v62 }
 0x160   : > { %v960_v48 = vsel %vm959_vm14, %v956_v20, %v954_v58  ;;  %v1015_v12 = vsel %vm1014_vm2, nan, %v1011_v17 }
 0x161   : > { %v961_v54 = vand.u32 2147483647, %v960_v48  ;;  %v1021_v26 = vsel %vm1020_vm3, %v1017_v10, %v1015_v12 }
 0x162   : > { %v1022_v42 = vand.u32 2147483647, %v1021_v26 }
 0x163   : > { %v963_v21 = vor.u32 %v962_v6, %v961_v54 }
 0x164   : > { %v1024_v31 = vor.u32 %v1023_v28, %v1022_v42 }
 0x165   : > { %1244 = vst.msk [vmem:[%s1491_s8 + $0x20] sm:$0x1f] %vm1025_vm9, %v963_v21  ;;  %1252 = vst.msk [vmem:[%s1655_s17 + $0x10] sm:$0x1f] %vm1025_vm9, %v963_v21 }
 0x166   : > { %1242 = vst.msk [vmem:[%s1491_s8 + $0x10] sm:$0x1f] %vm1025_vm9, %v1024_v31  ;;  %1047 = vst.msk [vmem:[%s1655_s17] sm:$0x1f] %vm1025_vm9, %v1024_v31 }
 0x187   : > { %v562_v56 = vpop.permute.xlu1 %561  ;;  %v550_v59 = vpop.permute.xlu0 %549 }
 0x188   : > { %553 = vst.msk [vmem:[%s261_s22] sm:$0x1f] %vm552_vm4, %v550_v59 }
 0x18b   : > { %v556_v35 = vpop.permute.xlu1 %555  ;;  %v542_v36 = vpop.permute.xlu0 %541 }
 0x18c   : > { %559 = vst.msk [vmem:[%s261_s22] sm:$0x1f] %vm558_vm7, %v556_v35 }
 0x18d   : > { %545 = vst.msk [vmem:[%s1571_s11] sm:$0x1f] %vm544_vm6, %v542_v36  ;;  %564 = vst.msk [vmem:[%s261_s22] sm:$0x1f] %vm544_vm6, %v562_v56 }
 0x18e   : > { %547 = vst.msk [vmem:[%s1571_s11] sm:$0x1f] %vm546_vm8, %v537_v34  ;;  %565 = vst.msk [vmem:[%s261_s22] sm:$0x1f] %vm546_vm8, %v1581_v30 }
 0x18f   : > { %v887_v63 = vpop.permute.xlu1 %886  ;;  %v878_v3 = vpop.permute.xlu0 %877 }
 0x190   : > { %v889_v38 = vsel %vm1424_vm0, %v1518_v29, %v887_v63  ;;  %v880_v0 = vsel %vm1424_vm0, %v1516_v27, %v878_v3 }
 0x191   : > { %1250 = vst.msk [vmem:[%s1491_s8 + $0x50] sm:$0x1f] %vm1025_vm9, %v889_v38  ;;  %1249 = vst.msk [vmem:[%s1491_s8 + $0x48] sm:$0x1f] %vm1025_vm9, %v880_v0 }
 0x192 PF: > { %s16_s18 = sadd.s32 1, %s1319_s18  }
 0x193   : > { %p13_p4 = scmp.ge.s32.totalorder %s16_s18, 4  }
 0x195   :  { %15 = sbr.rel (!%p13_p4) target bundleno = 1 (0x1), region = 109 }

</bundles_post_ra>
